<compile_context>
chip_gen: v5e
topology: v5e:2x2
jax: 0.10.0
libtpu: 0.0.40
codegen_flags: <defaults>
</compile_context>

<pallas_src>
import functools

import jax
import jax.numpy as jnp
from jax.experimental import pallas as pl
from jax.experimental.pallas import tpu as pltpu

# Problem sizes (match the original toy module).
B = 8     # batch
D = 32    # state / feature dim
H = 64    # hidden dim of the odefunc MLP

MAX_TILE_M = 512   # batch-tile rows per grid step (cap; sweep 256-512 at scale)


def _round_up(n, m):
    return ((n + m - 1) // m) * m


def _reg_odefunc_kernel(t_ref, x_ref, w1_ref, wt_ref, b1_ref, w2_ref, b2_ref,
                        dx_ref, part_ref, *, tile_m, n_valid_rows, mask_rows):
    """Fused odefunc MLP + per-tile L2 partial over one batch tile.

    t_ref   : (1, 1)      f32  SMEM scalar time
    x_ref   : (TM, D)     f32  VMEM batch tile
    w1_ref  : (D, H)      bf16 ; wt_ref/b1_ref : (1, H) f32
    w2_ref  : (H, D)      bf16 ; b2_ref        : (1, D) f32
    dx_ref  : (TM, D)     f32  output tile (dstate)
    part_ref: (1, 8, D)   f32  per-tile partial sum of dx**2 (VPU-reduced)
    """
    i = pl.program_id(0)
    t = t_ref[0, 0]
    x = x_ref[...]

    # Fold the time term into a single (1, H) bias for this tile.
    bias1 = t * wt_ref[...] + b1_ref[...]

    # Layer 1: bf16 MXU matmul, f32 accumulation; elementwise + tanh in f32.
    pre = jnp.dot(x.astype(jnp.bfloat16), w1_ref[...],
                  preferred_element_type=jnp.float32) + bias1
    h = jnp.tanh(pre)

    # Layer 2: bf16 MXU matmul, f32 accumulation.
    dx = jnp.dot(h.astype(jnp.bfloat16), w2_ref[...],
                 preferred_element_type=jnp.float32) + b2_ref[...]

    # regfunc: L2 partial for this tile (computed before the store so dx's
    # live range ends at the store). Padded batch rows (if any) are masked
    # so they never pollute the mean.
    sq = dx * dx
    if mask_rows:
        row = jax.lax.broadcasted_iota(jnp.int32, sq.shape, 0) + i * tile_m
        sq = jnp.where(row < n_valid_rows, sq, 0.0)
    if tile_m == 8:
        part = sq                                                   # (8, D)
    else:
        # Sublane-group fold: pure VPU adds, no XLU full reduce, no SMEM RMW.
        part = sq.reshape(tile_m // 8, 8, sq.shape[-1]).sum(axis=0)  # (8, D)

    dx_ref[...] = dx.astype(dx_ref.dtype)
    part_ref[0, :, :] = part


def prepare_odefunc_params(params):
    """One-time parameter prep, hoisted out of the per-evaluation path.

    Casts the two weight matrices to bf16 (MXU input dtype, halves their
    HBM->VMEM bytes) and 2-D-ifies the bias / time vectors. An ODE solver
    calls the odefunc dozens-hundreds of times per solve with identical
    weights, so none of this should run per call.
    """
    w1, wt, b1, w2, b2 = params
    return (w1.astype(jnp.bfloat16),
            wt.reshape(1, -1).astype(jnp.float32),
            b1.reshape(1, -1).astype(jnp.float32),
            w2.astype(jnp.bfloat16),
            b2.reshape(1, -1).astype(jnp.float32))


def regularized_odefunc_pallas(t, x, prepared):
    """Returns (dx, reg): dx has x's shape/dtype, reg is a (1, 1) f32 scalar."""
    w1b, wt2, b12, w2b, b22 = prepared
    b, d = x.shape
    h = w1b.shape[1]

    # Adaptive batch tiling: pad only to a multiple of 8 (f32 sublane tile),
    # cap the tile at 512 rows for large batches.
    bp0 = _round_up(b, 8)
    tm = min(bp0, MAX_TILE_M)
    bp = _round_up(bp0, tm)
    mask_rows = bp != b

    x_in = x
    if bp != b:
        x_in = jnp.zeros((bp, d), x.dtype).at[:b].set(x)

    n_tiles = bp // tm
    t_arr = jnp.asarray(t, jnp.float32).reshape(1, 1)

    kernel = functools.partial(_reg_odefunc_kernel, tile_m=tm,
                               n_valid_rows=b, mask_rows=mask_rows)

    dx_p, partials = pl.pallas_call(
        kernel,
        out_shape=(
            jax.ShapeDtypeStruct((bp, d), jnp.float32),
            jax.ShapeDtypeStruct((n_tiles, 8, d), jnp.float32),
        ),
        grid_spec=pltpu.PrefetchScalarGridSpec(
            num_scalar_prefetch=0,
            grid=(n_tiles,),
            in_specs=[
                pl.BlockSpec(memory_space=pltpu.MemorySpace.SMEM),  # t scalar
                pl.BlockSpec((tm, d), lambda i: (i, 0)),            # x tile
                pl.BlockSpec((d, h), lambda i: (0, 0)),             # W1 (resident)
                pl.BlockSpec((1, h), lambda i: (0, 0)),             # wt (resident)
                pl.BlockSpec((1, h), lambda i: (0, 0)),             # b1 (resident)
                pl.BlockSpec((h, d), lambda i: (0, 0)),             # W2 (resident)
                pl.BlockSpec((1, d), lambda i: (0, 0)),             # b2 (resident)
            ],
            out_specs=(
                pl.BlockSpec((tm, d), lambda i: (i, 0)),            # dx tile
                pl.BlockSpec((1, 8, d), lambda i: (i, 0, 0)),       # L2 partials
            ),
        ),
        compiler_params=pltpu.CompilerParams(
            # No cross-tile carried state -> batch tiles are independent and
            # may be sharded across TensorCores (v7x dual-TC).
            dimension_semantics=("parallel",),
        ),
    )(t_arr, x_in, w1b, wt2, b12, w2b, b22)

    dx = dx_p if bp == b else dx_p[:b]
    # Tiny trailing reduce over the per-tile partials (n_tiles * 8 * D elems).
    # NOTE: global scalar mean(dx**2) matches the toy l2 regfunc; per-sample
    # reg_state variants would keep the row axis here instead of reducing it.
    reg = (jnp.sum(partials) / jnp.float32(b * d)).reshape(1, 1)
    return dx, reg


def regularized_odefunc_forward(t, state, prepared):
    """Mirrors RegularizedODEfunc.forward semantics on a tuple `state`."""
    x = state[0]
    dx, reg = regularized_odefunc_pallas(t, x, prepared)
    if len(state) > 1:
        return (dx, reg)
    return dx
    # TODO(synk): autograd-based regularizers (Jacobian-Frobenius / kinetic
    # energy w.r.t. x, t) would need jax.jvp/vjp around the kernel; only
    # forward-value regfuncs (L2 of dx) are implemented here.


def _reference_f32(t, x, params):
    """Pure-f32 reference matching the original module math."""
    w1, wt, b1, w2, b2 = params
    h = jnp.tanh(x @ w1 + jnp.float32(t) * wt + b1)
    dx = h @ w2 + b2
    return dx, jnp.mean(dx * dx).reshape(1, 1)


def _reference_bf16(t, x, params):
    """Reference using the same bf16-MXU / f32-elementwise recipe as the kernel."""
    w1, wt, b1, w2, b2 = params
    pre = jnp.dot(x.astype(jnp.bfloat16), w1.astype(jnp.bfloat16),
                  preferred_element_type=jnp.float32)
    h = jnp.tanh(pre + jnp.float32(t) * wt + b1)
    dx = jnp.dot(h.astype(jnp.bfloat16), w2.astype(jnp.bfloat16),
                 preferred_element_type=jnp.float32) + b2
    return dx, jnp.mean(dx * dx).reshape(1, 1)


if __name__ == "__main__":
    key = jax.random.PRNGKey(0)
    kx, k1, kt, kb1, k2, kb2 = jax.random.split(key, 6)

    x = jax.random.normal(kx, (B, D), jnp.float32)
    t = jnp.float32(0.5)

    # Deterministic synthetic parameters for the odefunc MLP.
    w1 = jax.random.normal(k1, (D, H), jnp.float32) * 0.1
    wt = jax.random.normal(kt, (1, H), jnp.float32) * 0.1
    b1 = jax.random.normal(kb1, (1, H), jnp.float32) * 0.01
    w2 = jax.random.normal(k2, (H, D), jnp.float32) * 0.1
    b2 = jax.random.normal(kb2, (1, D), jnp.float32) * 0.01
    params = (w1, wt, b1, w2, b2)

    # Weight prep happens ONCE per ODE solve, not per odefunc evaluation.
    prepared = prepare_odefunc_params(params)
    fwd = jax.jit(functools.partial(regularized_odefunc_forward,
                                    prepared=prepared))

    # state = (x, accumulated_regularization) -> forward returns (dx, dreg)
    state = (x, jnp.zeros((1, 1), jnp.float32))
    dx, dreg = fwd(t, state)
    jax.block_until_ready((dx, dreg))

    # Check against a reference using the identical bf16-MXU recipe (tight).
    dx_b, dreg_b = _reference_bf16(t, x, params)
    assert jnp.allclose(dx, dx_b, atol=2e-3, rtol=2e-3), "dx vs matched ref"
    assert jnp.allclose(dreg, dreg_b, atol=2e-3, rtol=2e-3), "reg vs matched ref"

    # Fidelity check against pure-f32 module semantics (bf16 MXU tolerance).
    dx_f, dreg_f = _reference_f32(t, x, params)
    assert jnp.allclose(dx, dx_f, atol=5e-2, rtol=5e-2), "dx vs f32 ref"
    assert jnp.allclose(dreg, dreg_f, atol=5e-2, rtol=5e-2), "reg vs f32 ref"

    print("KERNEL_OK")
</pallas_src>

<mosaic_0001>
module attributes {stable_mosaic.version = 11 : i64} {
  func.func @_reg_odefunc_kernel(%arg0: i32, %arg1: memref<1x1xf32, #tpu.memory_space<smem>>, %arg2: memref<8x32xf32, #tpu.memory_space<vmem>>, %arg3: memref<32x64xbf16, #tpu.memory_space<vmem>>, %arg4: memref<1x64xf32, #tpu.memory_space<vmem>>, %arg5: memref<1x64xf32, #tpu.memory_space<vmem>>, %arg6: memref<64x32xbf16, #tpu.memory_space<vmem>>, %arg7: memref<1x32xf32, #tpu.memory_space<vmem>>, %arg8: memref<8x32xf32, #tpu.memory_space<vmem>>, %arg9: memref<1x8x32xf32, #tpu.memory_space<vmem>>) attributes {dimension_semantics = [#tpu.dimension_semantics<parallel>], iteration_bounds = array<i64: 1>, scalar_prefetch = 0 : i64, scratch_operands = 0 : i64, tpu.core_type = #tpu.core_type<tc>, window_params = [{transform_indices = @transform_0, window_bounds = array<i64: 1, 1>}, {transform_indices = @transform_1, window_bounds = array<i64: 8, 32>}, {pipeline_mode = #tpu.pipeline_mode<synchronous>, transform_indices = @transform_2, window_bounds = array<i64: 32, 64>}, {pipeline_mode = #tpu.pipeline_mode<synchronous>, transform_indices = @transform_3, window_bounds = array<i64: 1, 64>}, {pipeline_mode = #tpu.pipeline_mode<synchronous>, transform_indices = @transform_4, window_bounds = array<i64: 1, 64>}, {pipeline_mode = #tpu.pipeline_mode<synchronous>, transform_indices = @transform_5, window_bounds = array<i64: 64, 32>}, {pipeline_mode = #tpu.pipeline_mode<synchronous>, transform_indices = @transform_6, window_bounds = array<i64: 1, 32>}, {transform_indices = @transform_7, window_bounds = array<i64: 8, 32>}, {transform_indices = @transform_8, window_bounds = array<i64: 1, 8, 32>}]} {
    %c0 = arith.constant 0 : index
    %c0_0 = arith.constant 0 : index
    %0 = memref.load %arg1[%c0, %c0_0] : memref<1x1xf32, #tpu.memory_space<smem>>
    %c0_1 = arith.constant 0 : index
    %c0_2 = arith.constant 0 : index
    %1 = vector.load %arg2[%c0_1, %c0_2] : memref<8x32xf32, #tpu.memory_space<vmem>>, vector<8x32xf32>
    %c0_3 = arith.constant 0 : index
    %c0_4 = arith.constant 0 : index
    %2 = vector.load %arg4[%c0_3, %c0_4] : memref<1x64xf32, #tpu.memory_space<vmem>>, vector<1x64xf32>
    %3 = vector.broadcast %0 : f32 to vector<1x64xf32>
    %4 = arith.mulf %3, %2 : vector<1x64xf32>
    %c0_5 = arith.constant 0 : index
    %c0_6 = arith.constant 0 : index
    %5 = vector.load %arg5[%c0_5, %c0_6] : memref<1x64xf32, #tpu.memory_space<vmem>>, vector<1x64xf32>
    %6 = arith.addf %4, %5 : vector<1x64xf32>
    %7 = arith.truncf %1 : vector<8x32xf32> to vector<8x32xbf16>
    %c0_7 = arith.constant 0 : index
    %c0_8 = arith.constant 0 : index
    %8 = vector.load %arg3[%c0_7, %c0_8] : memref<32x64xbf16, #tpu.memory_space<vmem>>, vector<32x64xbf16>
    %cst = arith.constant dense<0.000000e+00> : vector<8x64xf32>
    %9 = tpu.matmul %7, %8, %cst {dimension_numbers = #tpu.dot_dimension_numbers<[1], [0], [0], [1], [0, 0, 1, 1], [], []>} : vector<8x32xbf16>, vector<32x64xbf16>, vector<8x64xf32> -> vector<8x64xf32>
    %10 = vector.broadcast %6 : vector<1x64xf32> to vector<8x64xf32>
    %11 = arith.addf %9, %10 : vector<8x64xf32>
    %12 = math.tanh %11 : vector<8x64xf32>
    %13 = arith.truncf %12 : vector<8x64xf32> to vector<8x64xbf16>
    %c0_9 = arith.constant 0 : index
    %c0_10 = arith.constant 0 : index
    %14 = vector.load %arg6[%c0_9, %c0_10] : memref<64x32xbf16, #tpu.memory_space<vmem>>, vector<64x32xbf16>
    %cst_11 = arith.constant dense<0.000000e+00> : vector<8x32xf32>
    %15 = tpu.matmul %13, %14, %cst_11 {dimension_numbers = #tpu.dot_dimension_numbers<[1], [0], [0], [1], [0, 0, 1, 1], [], []>} : vector<8x64xbf16>, vector<64x32xbf16>, vector<8x32xf32> -> vector<8x32xf32>
    %c0_12 = arith.constant 0 : index
    %c0_13 = arith.constant 0 : index
    %16 = vector.load %arg7[%c0_12, %c0_13] : memref<1x32xf32, #tpu.memory_space<vmem>>, vector<1x32xf32>
    %17 = vector.broadcast %16 : vector<1x32xf32> to vector<8x32xf32>
    %18 = arith.addf %15, %17 : vector<8x32xf32>
    %19 = arith.mulf %18, %18 : vector<8x32xf32>
    %c0_14 = arith.constant 0 : index
    %c0_15 = arith.constant 0 : index
    %20 = vector.load %arg8[%c0_14, %c0_15] : memref<8x32xf32, #tpu.memory_space<vmem>>, vector<8x32xf32>
    tpu.vector_store %arg8[%c0_14, %c0_15], %18 {strides = array<i32>} : memref<8x32xf32, #tpu.memory_space<vmem>>, vector<8x32xf32>,
    %c0_16 = arith.constant 0 : index
    %c0_17 = arith.constant 0 : index
    %c0_18 = arith.constant 0 : index
    %21 = vector.load %arg9[%c0_16, %c0_17, %c0_18] : memref<1x8x32xf32, #tpu.memory_space<vmem>>, vector<1x8x32xf32>
    %22 = vector.shape_cast %21 : vector<1x8x32xf32> to vector<8x32xf32>
    %23 = vector.shape_cast %19 : vector<8x32xf32> to vector<1x8x32xf32>
    tpu.vector_store %arg9[%c0_16, %c0_17, %c0_18], %23 {strides = array<i32>} : memref<1x8x32xf32, #tpu.memory_space<vmem>>, vector<1x8x32xf32>,
    return
  }
  func.func @transform_0(%arg0: i32) -> (i32, i32) {
    %c0_i32 = arith.constant 0 : i32
    %c0_i32_0 = arith.constant 0 : i32
    %c0_i32_1 = arith.constant 0 : i32
    return %c0_i32, %c0_i32_0 : i32, i32
  }
  func.func @transform_1(%arg0: i32) -> (i32, i32) {
    %c0_i32 = arith.constant 0 : i32
    %c0_i32_0 = arith.constant 0 : i32
    return %arg0, %c0_i32 : i32, i32
  }
  func.func @transform_2(%arg0: i32) -> (i32, i32) {
    %c0_i32 = arith.constant 0 : i32
    %c0_i32_0 = arith.constant 0 : i32
    %c0_i32_1 = arith.constant 0 : i32
    return %c0_i32, %c0_i32_0 : i32, i32
  }
  func.func @transform_3(%arg0: i32) -> (i32, i32) {
    %c0_i32 = arith.constant 0 : i32
    %c0_i32_0 = arith.constant 0 : i32
    %c0_i32_1 = arith.constant 0 : i32
    return %c0_i32, %c0_i32_0 : i32, i32
  }
  func.func @transform_4(%arg0: i32) -> (i32, i32) {
    %c0_i32 = arith.constant 0 : i32
    %c0_i32_0 = arith.constant 0 : i32
    %c0_i32_1 = arith.constant 0 : i32
    return %c0_i32, %c0_i32_0 : i32, i32
  }
  func.func @transform_5(%arg0: i32) -> (i32, i32) {
    %c0_i32 = arith.constant 0 : i32
    %c0_i32_0 = arith.constant 0 : i32
    %c0_i32_1 = arith.constant 0 : i32
    return %c0_i32, %c0_i32_0 : i32, i32
  }
  func.func @transform_6(%arg0: i32) -> (i32, i32) {
    %c0_i32 = arith.constant 0 : i32
    %c0_i32_0 = arith.constant 0 : i32
    %c0_i32_1 = arith.constant 0 : i32
    return %c0_i32, %c0_i32_0 : i32, i32
  }
  func.func @transform_7(%arg0: i32) -> (i32, i32) {
    %c0_i32 = arith.constant 0 : i32
    %c0_i32_0 = arith.constant 0 : i32
    return %arg0, %c0_i32 : i32, i32
  }
  func.func @transform_8(%arg0: i32) -> (i32, i32, i32) {
    %c0_i32 = arith.constant 0 : i32
    %c0_i32_0 = arith.constant 0 : i32
    %c0_i32_1 = arith.constant 0 : i32
    return %arg0, %c0_i32, %c0_i32_0 : i32, i32, i32
  }
}

</mosaic_0001>

<bundles_post_ra>
// kernel: regularized_odefunc_forward.1
= control target key start
LH: loop header
LB: loop body
LE: loop exit
PB: predicated region body
PF: predicated region fallthrough
CT: control target
= control target key end

     0   :  { %15 = vsyncpa [#allocation4], 0  ;;  %s424_s0 = inlined_call_operand.<no memory space> [shape: f32[1,1], index: 0, kind: input, shape index: {}]   ;;  %s425_s1 = inlined_call_operand.hbm [shape: f32[8,32], index: 1, kind: input, shape index: {}]   ;;  %s426_s2 = inlined_call_operand.hbm [shape: bf16[32,64], index: 2, kind: input, shape index: {}]   ;;  %s427_s3 = inlined_call_operand.vmem [shape: f32[1,64], index: 3, kind: input, shape index: {}]   ;;  %s428_s4 = inlined_call_operand.vmem [shape: f32[1,64], index: 4, kind: input, shape index: {}]   ;;  %s429_s5 = inlined_call_operand.hbm [shape: bf16[64,32], index: 5, kind: input, shape index: {}]   ;;  %s430_s6 = inlined_call_operand.vmem [shape: f32[1,32], index: 6, kind: input, shape index: {}]   ;;  %s431_s7 = inlined_call_operand.hbm [shape: f32[8,32], index: 7, kind: output, shape index: {0}]   ;;  %s432_s8 = inlined_call_operand.vmem [shape: f32[1,8,32], index: 8, kind: output, shape index: {1}]  }
   0x1   :  { %16 = vsyncpa [#allocation7], 0  ;;  %s35_s29 = sshll.u32 %s426_s2, 4  ;;  %s36_s29 = int_to_ptr.hbm [resolvable:$true] %s35_s29 }
   0x2   :  { %17 = vsyncpa [#allocation5], 0  ;;  %s343_s30 = smov [#allocation6]   ;;  %s25_s12 = sshll.u32 %s425_s1, 4  ;;  %s26_s12 = int_to_ptr.hbm [resolvable:$true] %s25_s12 }
   0x3   :  { %s37_s9 = sshll.u32 %s343_s30, 4  ;;  %s344_s13 = smov 64   ;;  %s38_s9 = int_to_ptr.vmem [resolvable:$true] %s37_s9 }
   0x4   :  { %s345_s14 = smov 4   ;;  %s346_s15 = smov [#allocation3]  }
   0x5   :  { %43 = dma.hbm_to_vmem [thread:$0]  %s36_s29, 256, %s38_s9, [#allocation7], %s344_s13, %s344_s13, %s345_s14  }
   0x6   :  { %s27_s16 = sshll.u32 %s346_s15, 4  ;;  %s52_s19 = sshll.u32 %s429_s5, 4  ;;  %s28_s16 = int_to_ptr.vmem [resolvable:$true] %s27_s16  ;;  %s53_s19 = int_to_ptr.hbm [resolvable:$true] %s52_s19 }
   0x7   :  { %30 = dma.hbm_to_vmem [thread:$0]  %s26_s12, 128, %s28_s16, [#allocation4]  }
   0x8   :  { %s347_s2 = smov [#allocation8]  }
   0x9   :  { %s54_s20 = sshll.u32 %s347_s2, 4  ;;  %s55_s20 = int_to_ptr.vmem [resolvable:$true] %s54_s20 }
   0xa   :  { %60 = dma.hbm_to_vmem [thread:$0]  %s53_s19, 512, %s55_s20, [#allocation7], %s344_s13, %s344_s13, %s345_s14  }
   0xb   :  { %337 = dma.done.wait [#allocation4], 128  }
   0xc   :  { %338 = vsyncadd [#allocation4], 4294967168 }
   0xd   :  { %339 = dma.done.wait [#allocation7], 768  }
   0xe   :  { %340 = vsyncadd [#allocation7], 4294966528  ;;  %v227_v0 = vld [vmem:[#allocation6 + $0x8] sm:$0xff]  ;;  %v226_v2 = vld [vmem:[#allocation6] sm:$0xff]  ;;  %vm103_vm0 = vcmask 261120   ;;  %v79_v9 = vstv %s424_s0  ;;  %vm158_vm1 = vcmask 523264  }
   0xf   :  { %v231_v1 = vld [vmem:[#allocation8 + $0x18] sm:$0xff]  ;;  %113 = vmatpush.bf16.msra.mxu0 %v227_v0  ;;  %v77_v3 = vld [vmem:[#allocation3] sm:$0xff]  ;;  %v230_v5 = vld [vmem:[#allocation8 + $0x10] sm:$0xff]  ;;  %s348_s0 = smov [#allocation9]  }
  0x10   :  { %166 = vmatpush.bf16.msra.mxu1 %v231_v1  ;;  %v83_v4 = vpack.c.bf16 %v77_v3, %v77_v3  ;;  %v229_v6 = vld [vmem:[#allocation8 + $0x8] sm:$0xff]  ;;  %v228_v7 = vld [vmem:[#allocation8] sm:$0xff]  ;;  %s183_s26 = sshll.u32 %s348_s0, 4  ;;  %s184_s26 = int_to_ptr.vmem [resolvable:$true] %s183_s26 }
  0x11   :  { %v78_v8 = vld [vmem:[%s427_s3] sm:$0x1] }
  0x12   :  { %v80_v10 = vmul.f32 %v79_v9, %v78_v8  ;;  %v81_v11 = vld [vmem:[%s428_s4] sm:$0x1]  ;;  %s185_s4 = sshll.u32 %s431_s7, 4  ;;  %s186_s4 = int_to_ptr.hbm [resolvable:$true] %s185_s4 }
  0x13   :  { %114 = vmatpush.bf16.msra.mxu0 %v226_v2  ;;  %v238_v19 = vld [vmem:[%s430_s6] ss:$0 sm:$0xff] }
  0x14   :  { %167 = vmatpush.bf16.msra.mxu1 %v230_v5  ;;  %v82_v12 = vadd.f32 %v81_v11, %v80_v10 }
  0x16   :  { %208 = vmatmul.msk.bf16.vlgmr.msra.gmra.mxu0 %vm103_vm0, %v83_v4  ;;  %v89_v13 = vperm.slane %v82_v12, 0 }
  0x18   :  { %168 = vmatpush.bf16.msra.mxu1 %v229_v6 }
  0x1c   :  { %169 = vmatpush.bf16.msra.mxu1 %v228_v7 }
  0x93   :  { %v116_v14 = vpop.f32.mrf.mxu0 }
  0x94   :  { %v117_v15 = vadd.f32 %v116_v14, %v89_v13 }
  0x96   :  { %239 = vtanh.f32 %v117_v15 }
  0x9b   :  { %v118_v16 = vpop.f32.mrf.mxu0 }
  0x9c   :  { %v240_v17 = vpop.eup %239 }
  0x9d   :  { %v121_v18 = vpack.c.bf16 %v240_v17, %v240_v17 }
  0x9f   :  { %225 = vmatmul.msk.bf16.vlgmr.msra.gmra.mxu1 %vm158_vm1, %v121_v18 }
 0x11c   :  { %v171_v20 = vpop.f32.mrf.mxu1 }
 0x11d   :  { %v172_v21 = vadd.f32 %v238_v19, %v171_v20 }
 0x11f   :  { %v175_v22 = vmul.f32 %v172_v21, %v172_v21  ;;  %176 = vst.msk [vmem:[#allocation9] sm:$0xff] %vm103_vm0, %v172_v21 }
 0x120   :  { %188 = dma.vmem_to_hbm [thread:$0]  %s184_s26, 128, %s186_s4, [#allocation5]  }
 0x121   :  { %177 = vst.msk [vmem:[%s432_s8] sm:$0xff] %vm103_vm0, %v175_v22 }
 0x124   :  { %v173_v23 = vpop.f32.mrf.mxu1 }
 0x125   :  { %341 = dma.done.wait [#allocation5], 128  }
 0x126   :  { %342 = vsyncadd [#allocation5], 4294967168 }
 0x127   :  { %197 = vsyncpa [#allocation4], 1 }
 0x128   :  { %198 = vsyncpa [#allocation7], 1 }
 0x129   :  { %199 = vsyncpa [#allocation5], 1 }

</bundles_post_ra>
